<compile_context>
chip_gen: v7x
topology: tpu7x:2x2x1
jax: 0.10.0
libtpu: 0.0.40
codegen_flags: <defaults>
</compile_context>

<pallas_src>
import numpy as np
import jax
import jax.numpy as jnp
from jax import lax
from jax.experimental import pallas as pl
from jax.experimental.pallas import tpu as pltpu

KSIZE = 21            # Conv2d kernel size
PAD = 10              # ReflectionPad2d(10)
SIGMA = 8.0
_VMEM_LIMIT = 32 * 1024 * 1024     # scoped VMEM limit (safe on v5e/v6e/v7x)
_BLOCK_BUDGET = 16 * 1024 * 1024   # target footprint of the per-step blocks
_MAX_BATCH_TILE = 8                # cap on the in-kernel batch unroll


def _gaussian_filter_delta_1d(size, center, sigma, truncate=4.0):
    """Replicates scipy.ndimage.gaussian_filter (mode='reflect') applied to a
    1-D delta, so outer(g1d, g1d) matches the PyTorch module's weights_init."""
    radius = int(truncate * sigma + 0.5)
    xs = np.arange(-radius, radius + 1, dtype=np.float64)
    w = np.exp(-0.5 * (xs / sigma) ** 2)
    w /= w.sum()
    a = np.zeros((size,), dtype=np.float64)
    a[center] = 1.0
    # scipy 'reflect' boundary == numpy 'symmetric' (edge value duplicated)
    ap = np.pad(a, radius, mode="symmetric")
    return np.array([np.dot(ap[i:i + 2 * radius + 1], w) for i in range(size)])


def make_gaussian_1d(sigma=SIGMA):
    """1-D factor of the (separable) 21x21 Gaussian weights."""
    return _gaussian_filter_delta_1d(KSIZE, KSIZE // 2, sigma)


def make_gaussian_kernel(sigma=SIGMA):
    """Full 21x21 weights, identical to the PyTorch module's conv weights."""
    g1d = make_gaussian_1d(sigma)
    return jnp.asarray(np.outer(g1d, g1d), dtype=jnp.float32)


def _reflect_index(idx, n):
    """PyTorch ReflectionPad2d index map (reflect WITHOUT repeating the edge).
    Valid because PAD <= n - 1 (asserted in the wrapper)."""
    if idx < 0:
        return -idx
    if idx >= n:
        return 2 * (n - 1) - idx
    return idx


def make_blur_matrices(g1d, h, w):
    """Fold ReflectionPad2d(10) + separable 21-tap Gaussian cross-correlation
    into two small banded matrices so that  out = A @ x @ B  per image."""
    g = np.asarray(g1d, dtype=np.float64)
    a = np.zeros((h, h), dtype=np.float64)
    for i in range(h):
        for ki in range(KSIZE):
            a[i, _reflect_index(i + ki - PAD, h)] += g[ki]
    b = np.zeros((w, w), dtype=np.float64)
    for j in range(w):
        for kj in range(KSIZE):
            b[_reflect_index(j + kj - PAD, w), j] += g[kj]
    return (jnp.asarray(a, dtype=jnp.float32),
            jnp.asarray(b, dtype=jnp.float32))


def _blur_kernel(a_ref, b_ref, x_ref, o_ref):
    # a_ref: (H, H)  row-pass matrix (constant across grid steps)
    # b_ref: (W, W)  column-pass matrix (constant across grid steps)
    # x_ref: (Bt, H, W)  input images
    # o_ref: (Bt, H, W)  blurred output
    a = a_ref[...]
    b = b_ref[...]
    bt = x_ref.shape[0]
    for i in range(bt):                       # small static unroll (<= 8)
        t = jnp.dot(a, x_ref[i], preferred_element_type=jnp.float32)
        o_ref[i] = jnp.dot(t, b, preferred_element_type=jnp.float32
                           ).astype(o_ref.dtype)


def _choose_batch_tile(n, h, w, budget=_BLOCK_BUDGET, cap=_MAX_BATCH_TILE):
    """Largest divisor Bt of n with Bt <= cap such that the per-step footprint
    (double-buffered input + output blocks, f32) fits the VMEM budget."""
    per_img = 4 * 4 * h * w
    bt = int(max(1, min(n, cap, budget // max(per_img, 1))))
    while n % bt:
        bt -= 1
    return bt


def gaussian_layer(x, g1d):
    """x: (N, C, H, W) float32 with C == 1. Returns (N, C, H, W)."""
    N, C, H, W = x.shape
    assert C == 1, "GaussianLayer is defined for a single channel"
    assert H > PAD and W > PAD, "ReflectionPad2d(10) requires H, W >= 11"

    a_mat, b_mat = make_blur_matrices(g1d, H, W)
    xr = x.reshape(N * C, H, W)
    Bt = _choose_batch_tile(N * C, H, W)

    out = pl.pallas_call(
        _blur_kernel,
        out_shape=jax.ShapeDtypeStruct((N * C, H, W), x.dtype),
        grid=((N * C) // Bt,),
        in_specs=[
            pl.BlockSpec((H, H), lambda b: (0, 0)),
            pl.BlockSpec((W, W), lambda b: (0, 0)),
            pl.BlockSpec((Bt, H, W), lambda b: (b, 0, 0)),
        ],
        out_specs=pl.BlockSpec((Bt, H, W), lambda b: (b, 0, 0)),
        compiler_params=pltpu.CompilerParams(
            dimension_semantics=("parallel",),
            vmem_limit_bytes=_VMEM_LIMIT,
        ),
    )(a_mat, b_mat, xr)

    return out.reshape(N, C, H, W)


if __name__ == "__main__":
    key = jax.random.PRNGKey(0)
    N, C, H, W = 2, 1, 16, 16
    x = jax.random.normal(key, (N, C, H, W), dtype=jnp.float32)

    g1d = make_gaussian_1d(SIGMA)

    y = jax.block_until_ready(gaussian_layer(x, g1d))
    assert y.shape == (N, C, H, W), y.shape

    # Independent reference: explicit reflection pad + full 21x21
    # cross-correlation with the 2-D Gaussian (exactly what the PyTorch
    # ReflectionPad2d + Conv2d pipeline computes).
    k2d = make_gaussian_kernel(SIGMA)
    xp = jnp.pad(x, ((0, 0), (0, 0), (PAD, PAD), (PAD, PAD)), mode="reflect")
    y_ref = lax.conv(xp, k2d[None, None, :, :], (1, 1), "VALID",
                     precision=lax.Precision.HIGHEST)
    err = float(jnp.max(jnp.abs(y - y_ref)))
    assert err < 5e-5, err

    print("KERNEL_OK")
</pallas_src>

<mosaic_0001>
module attributes {stable_mosaic.version = 11 : i64} {
  func.func @_blur_kernel(%arg0: i32, %arg1: memref<16x16xf32, #tpu.memory_space<vmem>>, %arg2: memref<16x16xf32, #tpu.memory_space<vmem>>, %arg3: memref<2x16x16xf32, #tpu.memory_space<vmem>>, %arg4: memref<2x16x16xf32, #tpu.memory_space<vmem>>) attributes {dimension_semantics = [#tpu.dimension_semantics<parallel>], iteration_bounds = array<i64: 1>, scalar_prefetch = 0 : i64, scratch_operands = 0 : i64, tpu.core_type = #tpu.core_type<tc>, window_params = [{pipeline_mode = #tpu.pipeline_mode<synchronous>, transform_indices = @transform_0, window_bounds = array<i64: 16, 16>}, {pipeline_mode = #tpu.pipeline_mode<synchronous>, transform_indices = @transform_1, window_bounds = array<i64: 16, 16>}, {transform_indices = @transform_2, window_bounds = array<i64: 2, 16, 16>}, {transform_indices = @transform_3, window_bounds = array<i64: 2, 16, 16>}]} {
    %c0 = arith.constant 0 : index
    %c0_0 = arith.constant 0 : index
    %0 = vector.load %arg1[%c0, %c0_0] : memref<16x16xf32, #tpu.memory_space<vmem>>, vector<16x16xf32>
    %c0_1 = arith.constant 0 : index
    %c0_2 = arith.constant 0 : index
    %1 = vector.load %arg2[%c0_1, %c0_2] : memref<16x16xf32, #tpu.memory_space<vmem>>, vector<16x16xf32>
    %c0_3 = arith.constant 0 : index
    %c0_4 = arith.constant 0 : index
    %c0_5 = arith.constant 0 : index
    %2 = vector.load %arg3[%c0_3, %c0_4, %c0_5] : memref<2x16x16xf32, #tpu.memory_space<vmem>>, vector<1x16x16xf32>
    %3 = vector.shape_cast %2 : vector<1x16x16xf32> to vector<16x16xf32>
    %cst = arith.constant dense<0.000000e+00> : vector<16x16xf32>
    %4 = tpu.matmul %0, %3, %cst {dimension_numbers = #tpu.dot_dimension_numbers<[1], [0], [0], [1], [0, 0, 1, 1], [], []>} : vector<16x16xf32>, vector<16x16xf32>, vector<16x16xf32> -> vector<16x16xf32>
    %cst_6 = arith.constant dense<0.000000e+00> : vector<16x16xf32>
    %5 = tpu.matmul %4, %1, %cst_6 {dimension_numbers = #tpu.dot_dimension_numbers<[1], [0], [0], [1], [0, 0, 1, 1], [], []>} : vector<16x16xf32>, vector<16x16xf32>, vector<16x16xf32> -> vector<16x16xf32>
    %c0_7 = arith.constant 0 : index
    %c0_8 = arith.constant 0 : index
    %c0_9 = arith.constant 0 : index
    %6 = vector.load %arg4[%c0_7, %c0_8, %c0_9] : memref<2x16x16xf32, #tpu.memory_space<vmem>>, vector<1x16x16xf32>
    %7 = vector.shape_cast %6 : vector<1x16x16xf32> to vector<16x16xf32>
    %8 = vector.shape_cast %5 : vector<16x16xf32> to vector<1x16x16xf32>
    tpu.vector_store %arg4[%c0_7, %c0_8, %c0_9], %8 {strides = array<i32>} : memref<2x16x16xf32, #tpu.memory_space<vmem>>, vector<1x16x16xf32>,
    %c1 = arith.constant 1 : index
    %c0_10 = arith.constant 0 : index
    %c0_11 = arith.constant 0 : index
    %9 = vector.load %arg3[%c1, %c0_10, %c0_11] : memref<2x16x16xf32, #tpu.memory_space<vmem>>, vector<1x16x16xf32>
    %10 = vector.shape_cast %9 : vector<1x16x16xf32> to vector<16x16xf32>
    %cst_12 = arith.constant dense<0.000000e+00> : vector<16x16xf32>
    %11 = tpu.matmul %0, %10, %cst_12 {dimension_numbers = #tpu.dot_dimension_numbers<[1], [0], [0], [1], [0, 0, 1, 1], [], []>} : vector<16x16xf32>, vector<16x16xf32>, vector<16x16xf32> -> vector<16x16xf32>
    %cst_13 = arith.constant dense<0.000000e+00> : vector<16x16xf32>
    %12 = tpu.matmul %11, %1, %cst_13 {dimension_numbers = #tpu.dot_dimension_numbers<[1], [0], [0], [1], [0, 0, 1, 1], [], []>} : vector<16x16xf32>, vector<16x16xf32>, vector<16x16xf32> -> vector<16x16xf32>
    %c1_14 = arith.constant 1 : index
    %c0_15 = arith.constant 0 : index
    %c0_16 = arith.constant 0 : index
    %13 = vector.load %arg4[%c1_14, %c0_15, %c0_16] : memref<2x16x16xf32, #tpu.memory_space<vmem>>, vector<1x16x16xf32>
    %14 = vector.shape_cast %13 : vector<1x16x16xf32> to vector<16x16xf32>
    %15 = vector.shape_cast %12 : vector<16x16xf32> to vector<1x16x16xf32>
    tpu.vector_store %arg4[%c1_14, %c0_15, %c0_16], %15 {strides = array<i32>} : memref<2x16x16xf32, #tpu.memory_space<vmem>>, vector<1x16x16xf32>,
    return
  }
  func.func @transform_0(%arg0: i32) -> (i32, i32) {
    %c0_i32 = arith.constant 0 : i32
    %c0_i32_0 = arith.constant 0 : i32
    %c0_i32_1 = arith.constant 0 : i32
    return %c0_i32, %c0_i32_0 : i32, i32
  }
  func.func @transform_1(%arg0: i32) -> (i32, i32) {
    %c0_i32 = arith.constant 0 : i32
    %c0_i32_0 = arith.constant 0 : i32
    %c0_i32_1 = arith.constant 0 : i32
    return %c0_i32, %c0_i32_0 : i32, i32
  }
  func.func @transform_2(%arg0: i32) -> (i32, i32, i32) {
    %c0_i32 = arith.constant 0 : i32
    %c0_i32_0 = arith.constant 0 : i32
    %c0_i32_1 = arith.constant 0 : i32
    return %arg0, %c0_i32, %c0_i32_0 : i32, i32, i32
  }
  func.func @transform_3(%arg0: i32) -> (i32, i32, i32) {
    %c0_i32 = arith.constant 0 : i32
    %c0_i32_0 = arith.constant 0 : i32
    %c0_i32_1 = arith.constant 0 : i32
    return %arg0, %c0_i32, %c0_i32_0 : i32, i32, i32
  }
}

</mosaic_0001>

<bundles_post_ra>
// kernel: tpu_custom_call.1
= control target key start
LH: loop header
LB: loop body
LE: loop exit
PB: predicated region body
PF: predicated region fallthrough
CT: control target
= control target key end

     0   :  { %8 = vsyncpa [#allocation3], 0  ;;  %s680_s0 = inlined_call_operand.hbm [shape: f32[16,16], index: 0, kind: input, shape index: {}]   ;;  %s681_s1 = inlined_call_operand.hbm [shape: f32[16,16], index: 1, kind: input, shape index: {}]   ;;  %s682_s2 = inlined_call_operand.hbm [shape: f32[2,16,16], index: 2, kind: input, shape index: {}]   ;;  %s683_s3 = inlined_call_operand.hbm [shape: f32[2,16,16], index: 3, kind: output, shape index: {}]  }
   0x1   :  { %9 = vsyncpa [#allocation6], 0 }
   0x2   :  { %10 = vsyncpa [#allocation4], 0  ;;  %s575_s12 = smov [#allocation5]   ;;  %s576_s14 = smov [#allocation2]  }
   0x3   :  { %s28_s13 = sshll.u32 %s575_s12, 4  ;;  %s16_s15 = sshll.u32 %s576_s14, 4  ;;  %s29_s13 = int_to_ptr.vmem [resolvable:$true] %s28_s13  ;;  %s601_s15 = int_to_ptr.vmem [resolvable:$true] %s16_s15 }
   0x4   :  { %s481_s18 = scalar_lea.hbm %s681_s1, 256 }
   0x5   :  { %p482_p0 = scmp.ne.s32.totalorder %s681_s1, %s481_s18  ;;  %p485_p1 = scmp.lt.u32.totalorder %s481_s18, %s681_s1 }
   0x7   :  { %p487_p2 = pnand %p485_p1, %p482_p0 }
   0x9   :  { %490 = shalt.err (!%p487_p2)
}
   0xa   :  { %s491_s23 = scalar_lea.vmem %s29_s13, 256  ;;  %p496_p4 = scmp.lt.s32.totalorder %s29_s13, %s29_s13 }
   0xb   :  { %p492_p3 = scmp.ne.s32.totalorder %s29_s13, %s491_s23  ;;  %p497_p5 = scmp.lt.s32.totalorder %s491_s23, %s491_s23 }
   0xd   :  { %p498_p6 = por %p497_p5, %p496_p4 }
   0xf   :  { %p499_p7 = pnand %p498_p6, %p492_p3 }
  0x11   :  { %502 = shalt.err (!%p499_p7)
}
  0x12   :  { %s577_s24 = smov 128   ;;  %s578_s25 = smov 8  }
  0x13   :  { %34 = dma.hbm_to_vmem [thread:$0]  %s681_s1, 256, %s29_s13, [#allocation6], %s577_s24, %s577_s24, %s578_s25  }
  0x14   :  { %s503_s30 = scalar_lea.hbm %s680_s0, 256 }
  0x15   :  { %p504_p8 = scmp.ne.s32.totalorder %s680_s0, %s503_s30  ;;  %p507_p9 = scmp.lt.u32.totalorder %s503_s30, %s680_s0 }
  0x17   :  { %p509_p10 = pnand %p507_p9, %p504_p8 }
  0x19   :  { %512 = shalt.err (!%p509_p10)
}
  0x1a   :  { %s513_s8 = scalar_lea.vmem %s601_s15, 256  ;;  %p518_p12 = scmp.lt.s32.totalorder %s601_s15, %s601_s15 }
  0x1b   :  { %p514_p11 = scmp.ne.s32.totalorder %s601_s15, %s513_s8  ;;  %p519_p13 = scmp.lt.s32.totalorder %s513_s8, %s513_s8 }
  0x1d   :  { %p520_p0 = por %p519_p13, %p518_p12 }
  0x1f   :  { %p521_p1 = pnand %p520_p0, %p514_p11 }
  0x21   :  { %524 = shalt.err (!%p521_p1)
}
  0x22   :  { %22 = dma.hbm_to_vmem [thread:$0]  %s680_s0, 256, %s601_s15, [#allocation3], %s577_s24, %s577_s24, %s578_s25  }
  0x23   :  { %s579_s10 = smov [#allocation7]   ;;  %s525_s14 = scalar_lea.hbm %s682_s2, 512 }
  0x24   :  { %s40_s11 = sshll.u32 %s579_s10, 4  ;;  %p526_p2 = scmp.ne.s32.totalorder %s682_s2, %s525_s14  ;;  %s41_s11 = int_to_ptr.vmem [resolvable:$true] %s40_s11 }
  0x25   :  { %p529_p3 = scmp.lt.u32.totalorder %s525_s14, %s682_s2 }
  0x27   :  { %p531_p4 = pnand %p529_p3, %p526_p2 }
  0x29   :  { %534 = shalt.err (!%p531_p4)
}
  0x2a   :  { %s535_s20 = scalar_lea.vmem %s41_s11, 512  ;;  %p540_p6 = scmp.lt.s32.totalorder %s41_s11, %s41_s11 }
  0x2b   :  { %p536_p5 = scmp.ne.s32.totalorder %s41_s11, %s535_s20  ;;  %p541_p7 = scmp.lt.s32.totalorder %s535_s20, %s535_s20 }
  0x2d   :  { %p542_p8 = por %p541_p7, %p540_p6 }
  0x2f   :  { %p543_p9 = pnand %p542_p8, %p536_p5 }
  0x31   :  { %546 = shalt.err (!%p543_p9)
}
  0x32   :  { %46 = dma.hbm_to_vmem [thread:$0]  %s682_s2, 512, %s41_s11, [#allocation6], %s577_s24, %s577_s24, %s578_s25  }
  0x33   :  { %569 = dma.done.wait [#allocation3], 256  }
  0x34   :  { %570 = vsyncadd [#allocation3], 4294967040 }
  0x35   :  { %571 = dma.done.wait [#allocation6], 768  }
  0x36   :  { %572 = vsyncadd [#allocation6], 4294966528  ;;  %vm62_vm0 = vcmask 130048   ;;  %v60_v0 = vld [vmem:[#allocation7] sm:$0xff]  ;;  %v61_v1 = vld [vmem:[#allocation7 + $0x8] sm:$0xff]  ;;  %s580_s2 = smov [#allocation8]  }
  0x37   :  { %v56_v2 = vld [vmem:[#allocation2] sm:$0xff]  ;;  %v459_v3 = vpack.c.bf16 %v61_v1, %v60_v0  ;;  %v228_v4 = vld [vmem:[#allocation7 + $0x10] sm:$0xff]  ;;  %v229_v5 = vld [vmem:[#allocation7 + $0x18] sm:$0xff]  ;;  %s394_s21 = sshll.u32 %s580_s2, 4  ;;  %s395_s21 = int_to_ptr.vmem [resolvable:$true] %s394_s21 }
  0x38   :  { %435 = vmatprep.mubr.msk.f32.mxu0 %vm62_vm0, %v56_v2  ;;  %v467_v6 = vpack.c.bf16 %v229_v5, %v228_v4  ;;  %v58_v7 = vld [vmem:[#allocation5] sm:$0xff]  ;;  %v59_v8 = vld [vmem:[#allocation5 + $0x8] sm:$0xff]  ;;  %v57_v10 = vld [vmem:[#allocation2 + $0x8] sm:$0xff]  ;;  %s547_s22 = scalar_lea.vmem %s395_s21, 512  ;;  %p552_p11 = scmp.lt.s32.totalorder %s395_s21, %s395_s21 }
  0x39   :  { %460 = vmatprep.subr.bf16.mxu0 %v459_v3  ;;  %v463_v9 = vpack.c.bf16 %v59_v8, %v58_v7  ;;  %p548_p10 = scmp.ne.s32.totalorder %s395_s21, %s547_s22  ;;  %p553_p12 = scmp.lt.s32.totalorder %s547_s22, %s547_s22 }
  0x3a   :  { %462 = vmatpush3.bf16.msra.mxu0 %v459_v3 }
  0x3b   :  { %468 = vmatprep.subr.bf16.mxu0 %v467_v6  ;;  %464 = vmatprep.subr.bf16.mxu1 %v463_v9  ;;  %p554_p13 = por %p553_p12, %p552_p11 }
  0x3c   :  { %466 = vmatpush3.bf16.msra.mxu1 %v463_v9 }
  0x3d   :  { %436 = vmatmul.mubr.msk.f32.vlgmr.msra.gmra.mrb[0].mxu0 %vm62_vm0, %v57_v10  ;;  %472 = vmatprep.subr.bf16.mxu1 %v463_v9  ;;  %p555_p0 = pnand %p554_p13, %p548_p10 }
  0x3e   :  { %470 = vmatpush3.bf16.msra.mxu0 %v467_v6  ;;  %449 = vmatprep.mubr.msk.f32.mxu0 %vm62_vm0, %v56_v2 }
  0x41   :  { %450 = vmatmul.mubr.msk.f32.vlgmr.msra.gmra.mrb[2].mxu0 %vm62_vm0, %v57_v10 }
 0x110   :  { %v437_v11 = vpop.f32.mrb[0].mxu0 }
 0x111   :  { %v135_v12 = vpop.f32.mrb[1].mxu0 }
 0x112   :  { %442 = vmatprep.mubr.msk.f32.mxu1 %vm62_vm0, %v135_v12 }
 0x113   :  { %443 = vmatmul.mubr.msk.f32.vlgmr.msra.gmra.mrb[0].mxu1 %vm62_vm0, %v437_v11 }
 0x114   :  { %v451_v13 = vpop.f32.mrb[2].mxu0  ;;  %474 = vmatpush3.bf16.msra.mxu1 %v463_v9 }
 0x115   :  { %v296_v14 = vpop.f32.mrb[3].mxu0 }
 0x116   :  { %456 = vmatprep.mubr.msk.f32.mxu1 %vm62_vm0, %v296_v14 }
 0x117   :  { %457 = vmatmul.mubr.msk.f32.vlgmr.msra.gmra.mrb[2].mxu1 %vm62_vm0, %v451_v13 }
 0x1e6   :  { %v444_v15 = vpop.f32.mrb[0].mxu1 }
 0x1e7   :  { %226 = vst.msk [vmem:[#allocation8 + $0x8] sm:$0xff] %vm62_vm0, %v444_v15  ;;  %v216_v16 = vpop.f32.mrb[1].mxu1 }
 0x1e8   :  { %225 = vst.msk [vmem:[#allocation8] sm:$0xff] %vm62_vm0, %v216_v16 }
 0x1ea   :  { %v458_v17 = vpop.f32.mrb[2].mxu1 }
 0x1eb   :  { %388 = vst.msk [vmem:[#allocation8 + $0x18] sm:$0xff] %vm62_vm0, %v458_v17  ;;  %v377_v18 = vpop.f32.mrb[3].mxu1 }
 0x1ec   :  { %387 = vst.msk [vmem:[#allocation8 + $0x10] sm:$0xff] %vm62_vm0, %v377_v18 }
 0x1ed   :  { %558 = shalt.err (!%p555_p0)
}
 0x1ee   :  { %s559_s27 = scalar_lea.hbm %s683_s3, 512 }
 0x1ef   :  { %p560_p1 = scmp.ne.s32.totalorder %s683_s3, %s559_s27  ;;  %p563_p2 = scmp.lt.u32.totalorder %s559_s27, %s683_s3 }
 0x1f1   :  { %p565_p3 = pnand %p563_p2, %p560_p1 }
 0x1f3   :  { %568 = shalt.err (!%p565_p3)
}
 0x1f4   :  { %400 = dma.vmem_to_hbm [thread:$0]  %s395_s21, 512, %s683_s3, [#allocation4], %s577_s24, %s577_s24, %s578_s25  }
 0x1f5   :  { %573 = dma.done.wait [#allocation4], 512  }
 0x1f6   :  { %574 = vsyncadd [#allocation4], 4294966784 }
 0x1f7   :  { %404 = vsyncpa [#allocation3], 1 }
 0x1f8   :  { %405 = vsyncpa [#allocation6], 1 }
 0x1f9   :  { %406 = vsyncpa [#allocation4], 1 }

</bundles_post_ra>
